<compile_context>
chip_gen: v6e
topology: v6e:2x2x1
jax: 0.10.0
libtpu: 0.0.40
codegen_flags: <defaults>
</compile_context>

<pallas_src>
import math
import functools

import jax
import jax.numpy as jnp
from jax import lax
from jax.experimental import pallas as pl
from jax.experimental.pallas import tpu as pltpu


def _mha_kernel(q_ref, k_ref, wq_ref, wk_ref, wv_ref, o_ref, kf_ref, vf_ref,
                acc_ref=None, *, num_heads, scale, batched_heads):
    f32 = jnp.float32
    t = pl.program_id(1)

    # ---- K/V projections: once per batch element, carried in VMEM scratch across Tq tiles ----
    @pl.when(t == 0)
    def _():
        k = k_ref[...]                                                     # (Tk, D)
        kf = jnp.dot(k, wk_ref[...], preferred_element_type=f32)          # (Tk, D)
        vf = jnp.dot(k, wv_ref[...], preferred_element_type=f32)          # (Tk, D)
        if batched_heads:
            Tk, D = kf.shape
            C = D // num_heads
            # head-major (h, Tk, C): relayout done once per batch, feeds batched matmuls directly
            kf = jnp.transpose(kf.reshape(Tk, num_heads, C), (1, 0, 2))
            vf = jnp.transpose(vf.reshape(Tk, num_heads, C), (1, 0, 2))
        kf_ref[...] = kf.astype(kf_ref.dtype)
        vf_ref[...] = vf.astype(vf_ref.dtype)

    # ---- Q projection for this query tile (scale folded in, single full-width cast) ----
    q = q_ref[...]                                                         # (tq, D) (also residual)
    in_dt = q.dtype
    qf = (jnp.dot(q, wq_ref[...], preferred_element_type=f32) * scale).astype(in_dt)
    tq, D = qf.shape
    C = D // num_heads

    if batched_heads:
        # All heads in one pair of batched MXU matmuls (good MXU utilization on v6e/v7x).
        qh = jnp.transpose(qf.reshape(tq, num_heads, C), (1, 0, 2))        # (h, tq, C)
        kh = kf_ref[...]                                                   # (h, Tk, C)
        vh = vf_ref[...]                                                   # (h, Tk, C)

        s = jnp.einsum('hqc,hkc->hqk', qh, kh, preferred_element_type=f32)  # (h, tq, Tk)
        m = jnp.max(s, axis=-1, keepdims=True)
        p = jnp.exp(s - m)
        inv_l = pl.reciprocal(jnp.sum(p, axis=-1, keepdims=True), approx=True)
        attn = (p * inv_l).astype(in_dt)

        ctx = jnp.einsum('hqk,hkc->hqc', attn, vh, preferred_element_type=f32)  # (h, tq, C)
        ctx = jnp.transpose(ctx, (1, 0, 2)).reshape(tq, D)                 # lane-dense (tq, D)
        o_ref[...] = (ctx + q.astype(f32)).astype(o_ref.dtype)
    else:
        # Conservative per-head path (C not a multiple of 128): 2-D matmuls only; each head's
        # context goes straight into the persistent f32 accumulator (bounded live ranges,
        # no concat), then a single dense (tq, D) store.
        kf = kf_ref[...]                                                   # (Tk, D), in_dt
        vf = vf_ref[...]                                                   # (Tk, D), in_dt
        for hd in range(num_heads):
            lo = hd * C
            qh = qf[:, lo:lo + C]                                          # (tq, C)
            kh = kf[:, lo:lo + C]                                          # (Tk, C)
            vh = vf[:, lo:lo + C]                                          # (Tk, C)

            # scores = qh @ kh^T without materializing a transpose of kh
            s = lax.dot_general(qh, kh, (((1,), (1,)), ((), ())),
                                preferred_element_type=f32)                # (tq, Tk)
            m = jnp.max(s, axis=-1, keepdims=True)
            p = jnp.exp(s - m)
            inv_l = pl.reciprocal(jnp.sum(p, axis=-1, keepdims=True), approx=True)
            attn = (p * inv_l).astype(in_dt)

            acc_ref[:, lo:lo + C] = jnp.dot(attn, vh, preferred_element_type=f32)

        o_ref[...] = (acc_ref[...] + q.astype(f32)).astype(o_ref.dtype)


def _vmem_capacity_bytes():
    """Per-TensorCore VMEM capacity; conservative fallback if the query is unavailable."""
    try:
        info = pltpu.get_tpu_info()
        cap = getattr(info, "vmem_capacity_bytes", None)
        if cap:
            return int(cap)
    except Exception:
        pass
    return 64 * 1024 * 1024      # v7x per-core VMEM (safe lower bound for v5e/v6e too)


def _vmem_need_bytes(tq, Tk, D, h, itemsize, batched_heads):
    """Rough per-grid-step VMEM footprint (default double-buffered BlockSpec inputs/outputs)."""
    f32 = 4
    need = 2 * tq * D * itemsize               # query tile
    need += 2 * Tk * D * itemsize              # keys block
    need += 3 * 2 * D * D * itemsize           # Wq^T / Wk^T / Wv^T (constant index, 2 bufs alloc'd)
    need += 2 * tq * D * itemsize              # output tile
    need += 2 * Tk * D * itemsize              # kf / vf projected K/V scratch
    if not batched_heads:
        need += tq * D * f32                   # per-head context accumulator
    # live f32 intermediates: scores + exp(scores), qf, ctx
    need += 2 * h * tq * Tk * f32 + 2 * tq * D * f32
    return need


def multi_head_attention(query, keys, wq, wk, wv, *, num_units, h):
    """query: (B, Tq, D), keys: (B, Tk, D); wq/wk/wv: (num_units, D) PyTorch Linear weights."""
    B, Tq, D = query.shape
    _, Tk, _ = keys.shape
    assert D == num_units and num_units % h == 0
    C = num_units // h
    scale = 1.0 / math.sqrt(float(num_units))   # key_dim == num_units in the PyTorch module
    itemsize = jnp.dtype(query.dtype).itemsize

    # Heads batched through the MXU only when the head dim is lane-aligned (per review);
    # otherwise fall back to per-head 2-D matmuls + accumulator scratch.
    batched_heads = (C % 128 == 0)

    # --- generation-aware tile selection (v7x: 64 MiB VMEM; v5e/v6e: 128 MiB) ---
    vmem_cap = _vmem_capacity_bytes()
    budget = int(0.70 * vmem_cap)
    cands = [Tq] + [c for c in (1024, 512, 256, 128) if c < Tq and Tq % c == 0]
    tq = cands[-1]
    for cand in cands:                           # largest tile that fits the budget
        if _vmem_need_bytes(cand, Tk, D, h, itemsize, batched_heads) <= budget:
            tq = cand
            break
    n_tq = Tq // tq
    need = _vmem_need_bytes(tq, Tk, D, h, itemsize, batched_heads)
    vmem_limit = int(min(0.9 * vmem_cap, max(2 * need, 32 * 1024 * 1024)))

    # x @ W.T == x @ (W.T); pass transposed weights once, keep resident in VMEM.
    wqT, wkT, wvT = wq.T, wk.T, wv.T             # (D, D)

    # Projected K/V scratch (per batch element), head-major when heads are batched.
    kv_shape = (h, Tk, C) if batched_heads else (Tk, D)
    scratch_shapes = [pltpu.VMEM(kv_shape, query.dtype),
                      pltpu.VMEM(kv_shape, query.dtype)]
    if not batched_heads:
        scratch_shapes.append(pltpu.VMEM((tq, D), jnp.float32))   # head-context accumulator

    # Honest advisory cost estimate (K/V projections counted once per batch element).
    flops = int(2 * B * Tq * D * D + 4 * B * Tk * D * D + 4 * B * Tq * Tk * D)
    transcendentals = int(B * h * Tq * Tk)
    bytes_accessed = int(itemsize * (2 * B * Tq * D + B * Tk * D + 3 * D * D))

    out = pl.pallas_call(
        functools.partial(_mha_kernel, num_heads=h, scale=scale, batched_heads=batched_heads),
        out_shape=jax.ShapeDtypeStruct((B, Tq, D), query.dtype),
        grid_spec=pltpu.PrefetchScalarGridSpec(
            num_scalar_prefetch=0,
            grid=(B, n_tq),
            in_specs=[
                pl.BlockSpec((None, tq, D), lambda b, t: (b, t, 0)),   # query tile (+ residual)
                pl.BlockSpec((None, Tk, D), lambda b, t: (b, 0, 0)),   # keys (re-DMA'd per b only)
                pl.BlockSpec((D, D), lambda b, t: (0, 0)),             # Wq^T (resident)
                pl.BlockSpec((D, D), lambda b, t: (0, 0)),             # Wk^T (resident)
                pl.BlockSpec((D, D), lambda b, t: (0, 0)),             # Wv^T (resident)
            ],
            out_specs=pl.BlockSpec((None, tq, D), lambda b, t: (b, t, 0)),
            scratch_shapes=scratch_shapes,
        ),
        compiler_params=pltpu.CompilerParams(
            dimension_semantics=("parallel", "arbitrary"),   # t carries K/V scratch -> arbitrary
            vmem_limit_bytes=vmem_limit),
        cost_estimate=pl.CostEstimate(
            flops=flops, transcendentals=transcendentals, bytes_accessed=bytes_accessed),
    )(query, keys, wqT, wkT, wvT)
    return out


def _reference(query, keys, wq, wk, wv, *, num_units, h):
    """Pure-JAX transcription of the PyTorch forward (mask=None, dropout inactive)."""
    Q = query @ wq.T
    K = keys @ wk.T
    V = keys @ wv.T
    Qh = jnp.concatenate(jnp.split(Q, h, axis=2), axis=0)
    Kh = jnp.concatenate(jnp.split(K, h, axis=2), axis=0)
    Vh = jnp.concatenate(jnp.split(V, h, axis=2), axis=0)
    att = jnp.matmul(Qh, jnp.swapaxes(Kh, 1, 2)) / jnp.sqrt(jnp.float32(num_units))
    att = jax.nn.softmax(att, axis=-1)
    att = jnp.matmul(att, Vh)
    att = jnp.concatenate(jnp.split(att, h, axis=0), axis=2)
    return att + query


if __name__ == "__main__":
    key = jax.random.PRNGKey(0)
    B, Tq, Tk = 2, 8, 8
    num_units = 32          # query_dim == key_dim == num_units
    h = 8                   # chunk = 4

    k1, k2, k3, k4, k5 = jax.random.split(key, 5)
    query = jax.random.normal(k1, (B, Tq, num_units), dtype=jnp.float32)
    keys_ = jax.random.normal(k2, (B, Tk, num_units), dtype=jnp.float32)

    # nn.Linear default init: U(-1/sqrt(fan_in), 1/sqrt(fan_in)), weight shape (out, in)
    bound = 1.0 / math.sqrt(num_units)
    wq = jax.random.uniform(k3, (num_units, num_units), jnp.float32, -bound, bound)
    wk = jax.random.uniform(k4, (num_units, num_units), jnp.float32, -bound, bound)
    wv = jax.random.uniform(k5, (num_units, num_units), jnp.float32, -bound, bound)

    out = multi_head_attention(query, keys_, wq, wk, wv, num_units=num_units, h=h)
    out = jax.block_until_ready(out)

    ref = _reference(query, keys_, wq, wk, wv, num_units=num_units, h=h)
    assert out.shape == (B, Tq, num_units)
    # Tolerance loosened vs exact-divide version: softmax denominator uses the EUP
    # approximate reciprocal (pl.reciprocal(approx=True)).
    assert jnp.allclose(out, ref, atol=2e-3, rtol=2e-3), "mismatch vs pure-JAX reference"

    print("KERNEL_OK")
</pallas_src>

<mosaic_0001>
module attributes {stable_mosaic.version = 11 : i64} {
  func.func @_mha_kernel(%arg0: i32, %arg1: i32, %arg2: memref<1x8x32xf32, #tpu.memory_space<vmem>>, %arg3: memref<1x8x32xf32, #tpu.memory_space<vmem>>, %arg4: memref<32x32xf32, #tpu.memory_space<vmem>>, %arg5: memref<32x32xf32, #tpu.memory_space<vmem>>, %arg6: memref<32x32xf32, #tpu.memory_space<vmem>>, %arg7: memref<1x8x32xf32, #tpu.memory_space<vmem>>, %arg8: memref<8x32xf32, #tpu.memory_space<vmem>>, %arg9: memref<8x32xf32, #tpu.memory_space<vmem>>, %arg10: memref<8x32xf32, #tpu.memory_space<vmem>>) attributes {dimension_semantics = [#tpu.dimension_semantics<parallel>, #tpu.dimension_semantics<arbitrary>], iteration_bounds = array<i64: 2, 1>, scalar_prefetch = 0 : i64, scratch_operands = 3 : i64, tpu.core_type = #tpu.core_type<tc>, window_params = [{transform_indices = @transform_0, window_bounds = array<i64: 1, 8, 32>}, {transform_indices = @transform_1, window_bounds = array<i64: 1, 8, 32>}, {pipeline_mode = #tpu.pipeline_mode<synchronous>, transform_indices = @transform_2, window_bounds = array<i64: 32, 32>}, {pipeline_mode = #tpu.pipeline_mode<synchronous>, transform_indices = @transform_3, window_bounds = array<i64: 32, 32>}, {pipeline_mode = #tpu.pipeline_mode<synchronous>, transform_indices = @transform_4, window_bounds = array<i64: 32, 32>}, {transform_indices = @transform_5, window_bounds = array<i64: 1, 8, 32>}]} {
    %c0_i32 = arith.constant 0 : i32
    %0 = arith.cmpi eq, %arg1, %c0_i32 : i32
    %1 = arith.extui %0 : i1 to i32
    %c0_i32_0 = arith.constant 0 : i32
    %2 = arith.cmpi ne, %1, %c0_i32_0 : i32
    scf.if %2 {
      %c0_56 = arith.constant 0 : index
      %c0_57 = arith.constant 0 : index
      %c0_58 = arith.constant 0 : index
      %144 = vector.load %arg3[%c0_56, %c0_57, %c0_58] : memref<1x8x32xf32, #tpu.memory_space<vmem>>, vector<1x8x32xf32>
      %145 = vector.shape_cast %144 : vector<1x8x32xf32> to vector<8x32xf32>
      %c0_59 = arith.constant 0 : index
      %c0_60 = arith.constant 0 : index
      %146 = vector.load %arg5[%c0_59, %c0_60] : memref<32x32xf32, #tpu.memory_space<vmem>>, vector<32x32xf32>
      %cst_61 = arith.constant dense<0.000000e+00> : vector<8x32xf32>
      %147 = tpu.matmul %145, %146, %cst_61 {dimension_numbers = #tpu.dot_dimension_numbers<[1], [0], [0], [1], [0, 0, 1, 1], [], []>} : vector<8x32xf32>, vector<32x32xf32>, vector<8x32xf32> -> vector<8x32xf32>
      %c0_62 = arith.constant 0 : index
      %c0_63 = arith.constant 0 : index
      %148 = vector.load %arg6[%c0_62, %c0_63] : memref<32x32xf32, #tpu.memory_space<vmem>>, vector<32x32xf32>
      %cst_64 = arith.constant dense<0.000000e+00> : vector<8x32xf32>
      %149 = tpu.matmul %145, %148, %cst_64 {dimension_numbers = #tpu.dot_dimension_numbers<[1], [0], [0], [1], [0, 0, 1, 1], [], []>} : vector<8x32xf32>, vector<32x32xf32>, vector<8x32xf32> -> vector<8x32xf32>
      %c0_65 = arith.constant 0 : index
      %c0_66 = arith.constant 0 : index
      %150 = vector.load %arg8[%c0_65, %c0_66] : memref<8x32xf32, #tpu.memory_space<vmem>>, vector<8x32xf32>
      tpu.vector_store %arg8[%c0_65, %c0_66], %147 {strides = array<i32>} : memref<8x32xf32, #tpu.memory_space<vmem>>, vector<8x32xf32>,
      %c0_67 = arith.constant 0 : index
      %c0_68 = arith.constant 0 : index
      %151 = vector.load %arg9[%c0_67, %c0_68] : memref<8x32xf32, #tpu.memory_space<vmem>>, vector<8x32xf32>
      tpu.vector_store %arg9[%c0_67, %c0_68], %149 {strides = array<i32>} : memref<8x32xf32, #tpu.memory_space<vmem>>, vector<8x32xf32>,
    } else {
    }
    %c0 = arith.constant 0 : index
    %c0_1 = arith.constant 0 : index
    %c0_2 = arith.constant 0 : index
    %3 = vector.load %arg2[%c0, %c0_1, %c0_2] : memref<1x8x32xf32, #tpu.memory_space<vmem>>, vector<1x8x32xf32>
    %4 = vector.shape_cast %3 : vector<1x8x32xf32> to vector<8x32xf32>
    %c0_3 = arith.constant 0 : index
    %c0_4 = arith.constant 0 : index
    %5 = vector.load %arg4[%c0_3, %c0_4] : memref<32x32xf32, #tpu.memory_space<vmem>>, vector<32x32xf32>
    %cst = arith.constant dense<0.000000e+00> : vector<8x32xf32>
    %6 = tpu.matmul %4, %5, %cst {dimension_numbers = #tpu.dot_dimension_numbers<[1], [0], [0], [1], [0, 0, 1, 1], [], []>} : vector<8x32xf32>, vector<32x32xf32>, vector<8x32xf32> -> vector<8x32xf32>
    %cst_5 = arith.constant 0.176776692 : f32
    %7 = vector.broadcast %cst_5 : f32 to vector<8x32xf32>
    %8 = arith.mulf %6, %7 : vector<8x32xf32>
    %c0_6 = arith.constant 0 : index
    %c0_7 = arith.constant 0 : index
    %9 = vector.load %arg8[%c0_6, %c0_7] : memref<8x32xf32, #tpu.memory_space<vmem>>, vector<8x32xf32>
    %c0_8 = arith.constant 0 : index
    %c0_9 = arith.constant 0 : index
    %10 = vector.load %arg9[%c0_8, %c0_9] : memref<8x32xf32, #tpu.memory_space<vmem>>, vector<8x32xf32>
    %11 = vector.extract_strided_slice %8 {offsets = [0, 0], sizes = [8, 4], strides = [1, 1]} : vector<8x32xf32> to vector<8x4xf32>
    %12 = vector.extract_strided_slice %9 {offsets = [0, 0], sizes = [8, 4], strides = [1, 1]} : vector<8x32xf32> to vector<8x4xf32>
    %13 = vector.extract_strided_slice %10 {offsets = [0, 0], sizes = [8, 4], strides = [1, 1]} : vector<8x32xf32> to vector<8x4xf32>
    %cst_10 = arith.constant dense<0.000000e+00> : vector<8x8xf32>
    %14 = tpu.matmul %11, %12, %cst_10 {dimension_numbers = #tpu.dot_dimension_numbers<[1], [1], [0], [0], [0, 0, 1, 0], [], []>} : vector<8x4xf32>, vector<8x4xf32>, vector<8x8xf32> -> vector<8x8xf32>
    %cst_11 = arith.constant dense<0xFF800000> : vector<8xf32>
    %15 = vector.multi_reduction <maximumf>, %14, %cst_11 [1] : vector<8x8xf32> to vector<8xf32>
    %16 = vector.shape_cast %15 : vector<8xf32> to vector<8x1xf32>
    %17 = vector.broadcast %16 : vector<8x1xf32> to vector<8x8xf32>
    %18 = arith.subf %14, %17 : vector<8x8xf32>
    %19 = math.exp %18 : vector<8x8xf32>
    %cst_12 = arith.constant dense<0.000000e+00> : vector<8xf32>
    %20 = vector.multi_reduction <add>, %19, %cst_12 [1] : vector<8x8xf32> to vector<8xf32>
    %21 = vector.shape_cast %20 : vector<8xf32> to vector<8x1xf32>
    %22 = tpu.reciprocal %21 {approx = true} : vector<8x1xf32> -> vector<8x1xf32>
    %23 = vector.broadcast %22 : vector<8x1xf32> to vector<8x8xf32>
    %24 = arith.mulf %19, %23 : vector<8x8xf32>
    %cst_13 = arith.constant dense<0.000000e+00> : vector<8x4xf32>
    %25 = tpu.matmul %24, %13, %cst_13 {dimension_numbers = #tpu.dot_dimension_numbers<[1], [0], [0], [1], [0, 0, 1, 1], [], []>} : vector<8x8xf32>, vector<8x4xf32>, vector<8x4xf32> -> vector<8x4xf32>
    %c0_14 = arith.constant 0 : index
    %c0_15 = arith.constant 0 : index
    %26 = vector.load %arg10[%c0_14, %c0_15] : memref<8x32xf32, #tpu.memory_space<vmem>>, vector<8x4xf32>
    tpu.vector_store %arg10[%c0_14, %c0_15], %25 {strides = array<i32>} : memref<8x32xf32, #tpu.memory_space<vmem>>, vector<8x4xf32>,
    %27 = vector.extract_strided_slice %8 {offsets = [0, 4], sizes = [8, 4], strides = [1, 1]} : vector<8x32xf32> to vector<8x4xf32>
    %28 = vector.extract_strided_slice %9 {offsets = [0, 4], sizes = [8, 4], strides = [1, 1]} : vector<8x32xf32> to vector<8x4xf32>
    %29 = vector.extract_strided_slice %10 {offsets = [0, 4], sizes = [8, 4], strides = [1, 1]} : vector<8x32xf32> to vector<8x4xf32>
    %cst_16 = arith.constant dense<0.000000e+00> : vector<8x8xf32>
    %30 = tpu.matmul %27, %28, %cst_16 {dimension_numbers = #tpu.dot_dimension_numbers<[1], [1], [0], [0], [0, 0, 1, 0], [], []>} : vector<8x4xf32>, vector<8x4xf32>, vector<8x8xf32> -> vector<8x8xf32>
    %cst_17 = arith.constant dense<0xFF800000> : vector<8xf32>
    %31 = vector.multi_reduction <maximumf>, %30, %cst_17 [1] : vector<8x8xf32> to vector<8xf32>
    %32 = vector.shape_cast %31 : vector<8xf32> to vector<8x1xf32>
    %33 = vector.broadcast %32 : vector<8x1xf32> to vector<8x8xf32>
    %34 = arith.subf %30, %33 : vector<8x8xf32>
    %35 = math.exp %34 : vector<8x8xf32>
    %cst_18 = arith.constant dense<0.000000e+00> : vector<8xf32>
    %36 = vector.multi_reduction <add>, %35, %cst_18 [1] : vector<8x8xf32> to vector<8xf32>
    %37 = vector.shape_cast %36 : vector<8xf32> to vector<8x1xf32>
    %38 = tpu.reciprocal %37 {approx = true} : vector<8x1xf32> -> vector<8x1xf32>
    %39 = vector.broadcast %38 : vector<8x1xf32> to vector<8x8xf32>
    %40 = arith.mulf %35, %39 : vector<8x8xf32>
    %cst_19 = arith.constant dense<0.000000e+00> : vector<8x4xf32>
    %41 = tpu.matmul %40, %29, %cst_19 {dimension_numbers = #tpu.dot_dimension_numbers<[1], [0], [0], [1], [0, 0, 1, 1], [], []>} : vector<8x8xf32>, vector<8x4xf32>, vector<8x4xf32> -> vector<8x4xf32>
    %c0_20 = arith.constant 0 : index
    %c4 = arith.constant 4 : index
    %42 = vector.load %arg10[%c0_20, %c4] : memref<8x32xf32, #tpu.memory_space<vmem>>, vector<8x4xf32>
    tpu.vector_store %arg10[%c0_20, %c4], %41 {strides = array<i32>} : memref<8x32xf32, #tpu.memory_space<vmem>>, vector<8x4xf32>,
    %43 = vector.extract_strided_slice %8 {offsets = [0, 8], sizes = [8, 4], strides = [1, 1]} : vector<8x32xf32> to vector<8x4xf32>
    %44 = vector.extract_strided_slice %9 {offsets = [0, 8], sizes = [8, 4], strides = [1, 1]} : vector<8x32xf32> to vector<8x4xf32>
    %45 = vector.extract_strided_slice %10 {offsets = [0, 8], sizes = [8, 4], strides = [1, 1]} : vector<8x32xf32> to vector<8x4xf32>
    %cst_21 = arith.constant dense<0.000000e+00> : vector<8x8xf32>
    %46 = tpu.matmul %43, %44, %cst_21 {dimension_numbers = #tpu.dot_dimension_numbers<[1], [1], [0], [0], [0, 0, 1, 0], [], []>} : vector<8x4xf32>, vector<8x4xf32>, vector<8x8xf32> -> vector<8x8xf32>
    %cst_22 = arith.constant dense<0xFF800000> : vector<8xf32>
    %47 = vector.multi_reduction <maximumf>, %46, %cst_22 [1] : vector<8x8xf32> to vector<8xf32>
    %48 = vector.shape_cast %47 : vector<8xf32> to vector<8x1xf32>
    %49 = vector.broadcast %48 : vector<8x1xf32> to vector<8x8xf32>
    %50 = arith.subf %46, %49 : vector<8x8xf32>
    %51 = math.exp %50 : vector<8x8xf32>
    %cst_23 = arith.constant dense<0.000000e+00> : vector<8xf32>
    %52 = vector.multi_reduction <add>, %51, %cst_23 [1] : vector<8x8xf32> to vector<8xf32>
    %53 = vector.shape_cast %52 : vector<8xf32> to vector<8x1xf32>
    %54 = tpu.reciprocal %53 {approx = true} : vector<8x1xf32> -> vector<8x1xf32>
    %55 = vector.broadcast %54 : vector<8x1xf32> to vector<8x8xf32>
    %56 = arith.mulf %51, %55 : vector<8x8xf32>
    %cst_24 = arith.constant dense<0.000000e+00> : vector<8x4xf32>
    %57 = tpu.matmul %56, %45, %cst_24 {dimension_numbers = #tpu.dot_dimension_numbers<[1], [0], [0], [1], [0, 0, 1, 1], [], []>} : vector<8x8xf32>, vector<8x4xf32>, vector<8x4xf32> -> vector<8x4xf32>
    %c0_25 = arith.constant 0 : index
    %c8 = arith.constant 8 : index
    %58 = vector.load %arg10[%c0_25, %c8] : memref<8x32xf32, #tpu.memory_space<vmem>>, vector<8x4xf32>
    tpu.vector_store %arg10[%c0_25, %c8], %57 {strides = array<i32>} : memref<8x32xf32, #tpu.memory_space<vmem>>, vector<8x4xf32>,
    %59 = vector.extract_strided_slice %8 {offsets = [0, 12], sizes = [8, 4], strides = [1, 1]} : vector<8x32xf32> to vector<8x4xf32>
    %60 = vector.extract_strided_slice %9 {offsets = [0, 12], sizes = [8, 4], strides = [1, 1]} : vector<8x32xf32> to vector<8x4xf32>
    %61 = vector.extract_strided_slice %10 {offsets = [0, 12], sizes = [8, 4], strides = [1, 1]} : vector<8x32xf32> to vector<8x4xf32>
    %cst_26 = arith.constant dense<0.000000e+00> : vector<8x8xf32>
    %62 = tpu.matmul %59, %60, %cst_26 {dimension_numbers = #tpu.dot_dimension_numbers<[1], [1], [0], [0], [0, 0, 1, 0], [], []>} : vector<8x4xf32>, vector<8x4xf32>, vector<8x8xf32> -> vector<8x8xf32>
    %cst_27 = arith.constant dense<0xFF800000> : vector<8xf32>
    %63 = vector.multi_reduction <maximumf>, %62, %cst_27 [1] : vector<8x8xf32> to vector<8xf32>
    %64 = vector.shape_cast %63 : vector<8xf32> to vector<8x1xf32>
    %65 = vector.broadcast %64 : vector<8x1xf32> to vector<8x8xf32>
    %66 = arith.subf %62, %65 : vector<8x8xf32>
    %67 = math.exp %66 : vector<8x8xf32>
    %cst_28 = arith.constant dense<0.000000e+00> : vector<8xf32>
    %68 = vector.multi_reduction <add>, %67, %cst_28 [1] : vector<8x8xf32> to vector<8xf32>
    %69 = vector.shape_cast %68 : vector<8xf32> to vector<8x1xf32>
    %70 = tpu.reciprocal %69 {approx = true} : vector<8x1xf32> -> vector<8x1xf32>
    %71 = vector.broadcast %70 : vector<8x1xf32> to vector<8x8xf32>
    %72 = arith.mulf %67, %71 : vector<8x8xf32>
    %cst_29 = arith.constant dense<0.000000e+00> : vector<8x4xf32>
    %73 = tpu.matmul %72, %61, %cst_29 {dimension_numbers = #tpu.dot_dimension_numbers<[1], [0], [0], [1], [0, 0, 1, 1], [], []>} : vector<8x8xf32>, vector<8x4xf32>, vector<8x4xf32> -> vector<8x4xf32>
    %c0_30 = arith.constant 0 : index
    %c12 = arith.constant 12 : index
    %74 = vector.load %arg10[%c0_30, %c12] : memref<8x32xf32, #tpu.memory_space<vmem>>, vector<8x4xf32>
    tpu.vector_store %arg10[%c0_30, %c12], %73 {strides = array<i32>} : memref<8x32xf32, #tpu.memory_space<vmem>>, vector<8x4xf32>,
    %75 = vector.extract_strided_slice %8 {offsets = [0, 16], sizes = [8, 4], strides = [1, 1]} : vector<8x32xf32> to vector<8x4xf32>
    %76 = vector.extract_strided_slice %9 {offsets = [0, 16], sizes = [8, 4], strides = [1, 1]} : vector<8x32xf32> to vector<8x4xf32>
    %77 = vector.extract_strided_slice %10 {offsets = [0, 16], sizes = [8, 4], strides = [1, 1]} : vector<8x32xf32> to vector<8x4xf32>
    %cst_31 = arith.constant dense<0.000000e+00> : vector<8x8xf32>
    %78 = tpu.matmul %75, %76, %cst_31 {dimension_numbers = #tpu.dot_dimension_numbers<[1], [1], [0], [0], [0, 0, 1, 0], [], []>} : vector<8x4xf32>, vector<8x4xf32>, vector<8x8xf32> -> vector<8x8xf32>
    %cst_32 = arith.constant dense<0xFF800000> : vector<8xf32>
    %79 = vector.multi_reduction <maximumf>, %78, %cst_32 [1] : vector<8x8xf32> to vector<8xf32>
    %80 = vector.shape_cast %79 : vector<8xf32> to vector<8x1xf32>
    %81 = vector.broadcast %80 : vector<8x1xf32> to vector<8x8xf32>
    %82 = arith.subf %78, %81 : vector<8x8xf32>
    %83 = math.exp %82 : vector<8x8xf32>
    %cst_33 = arith.constant dense<0.000000e+00> : vector<8xf32>
    %84 = vector.multi_reduction <add>, %83, %cst_33 [1] : vector<8x8xf32> to vector<8xf32>
    %85 = vector.shape_cast %84 : vector<8xf32> to vector<8x1xf32>
    %86 = tpu.reciprocal %85 {approx = true} : vector<8x1xf32> -> vector<8x1xf32>
    %87 = vector.broadcast %86 : vector<8x1xf32> to vector<8x8xf32>
    %88 = arith.mulf %83, %87 : vector<8x8xf32>
    %cst_34 = arith.constant dense<0.000000e+00> : vector<8x4xf32>
    %89 = tpu.matmul %88, %77, %cst_34 {dimension_numbers = #tpu.dot_dimension_numbers<[1], [0], [0], [1], [0, 0, 1, 1], [], []>} : vector<8x8xf32>, vector<8x4xf32>, vector<8x4xf32> -> vector<8x4xf32>
    %c0_35 = arith.constant 0 : index
    %c16 = arith.constant 16 : index
    %90 = vector.load %arg10[%c0_35, %c16] : memref<8x32xf32, #tpu.memory_space<vmem>>, vector<8x4xf32>
    tpu.vector_store %arg10[%c0_35, %c16], %89 {strides = array<i32>} : memref<8x32xf32, #tpu.memory_space<vmem>>, vector<8x4xf32>,
    %91 = vector.extract_strided_slice %8 {offsets = [0, 20], sizes = [8, 4], strides = [1, 1]} : vector<8x32xf32> to vector<8x4xf32>
    %92 = vector.extract_strided_slice %9 {offsets = [0, 20], sizes = [8, 4], strides = [1, 1]} : vector<8x32xf32> to vector<8x4xf32>
    %93 = vector.extract_strided_slice %10 {offsets = [0, 20], sizes = [8, 4], strides = [1, 1]} : vector<8x32xf32> to vector<8x4xf32>
    %cst_36 = arith.constant dense<0.000000e+00> : vector<8x8xf32>
    %94 = tpu.matmul %91, %92, %cst_36 {dimension_numbers = #tpu.dot_dimension_numbers<[1], [1], [0], [0], [0, 0, 1, 0], [], []>} : vector<8x4xf32>, vector<8x4xf32>, vector<8x8xf32> -> vector<8x8xf32>
    %cst_37 = arith.constant dense<0xFF800000> : vector<8xf32>
    %95 = vector.multi_reduction <maximumf>, %94, %cst_37 [1] : vector<8x8xf32> to vector<8xf32>
    %96 = vector.shape_cast %95 : vector<8xf32> to vector<8x1xf32>
    %97 = vector.broadcast %96 : vector<8x1xf32> to vector<8x8xf32>
    %98 = arith.subf %94, %97 : vector<8x8xf32>
    %99 = math.exp %98 : vector<8x8xf32>
    %cst_38 = arith.constant dense<0.000000e+00> : vector<8xf32>
    %100 = vector.multi_reduction <add>, %99, %cst_38 [1] : vector<8x8xf32> to vector<8xf32>
    %101 = vector.shape_cast %100 : vector<8xf32> to vector<8x1xf32>
    %102 = tpu.reciprocal %101 {approx = true} : vector<8x1xf32> -> vector<8x1xf32>
    %103 = vector.broadcast %102 : vector<8x1xf32> to vector<8x8xf32>
    %104 = arith.mulf %99, %103 : vector<8x8xf32>
    %cst_39 = arith.constant dense<0.000000e+00> : vector<8x4xf32>
    %105 = tpu.matmul %104, %93, %cst_39 {dimension_numbers = #tpu.dot_dimension_numbers<[1], [0], [0], [1], [0, 0, 1, 1], [], []>} : vector<8x8xf32>, vector<8x4xf32>, vector<8x4xf32> -> vector<8x4xf32>
    %c0_40 = arith.constant 0 : index
    %c20 = arith.constant 20 : index
    %106 = vector.load %arg10[%c0_40, %c20] : memref<8x32xf32, #tpu.memory_space<vmem>>, vector<8x4xf32>
    tpu.vector_store %arg10[%c0_40, %c20], %105 {strides = array<i32>} : memref<8x32xf32, #tpu.memory_space<vmem>>, vector<8x4xf32>,
    %107 = vector.extract_strided_slice %8 {offsets = [0, 24], sizes = [8, 4], strides = [1, 1]} : vector<8x32xf32> to vector<8x4xf32>
    %108 = vector.extract_strided_slice %9 {offsets = [0, 24], sizes = [8, 4], strides = [1, 1]} : vector<8x32xf32> to vector<8x4xf32>
    %109 = vector.extract_strided_slice %10 {offsets = [0, 24], sizes = [8, 4], strides = [1, 1]} : vector<8x32xf32> to vector<8x4xf32>
    %cst_41 = arith.constant dense<0.000000e+00> : vector<8x8xf32>
    %110 = tpu.matmul %107, %108, %cst_41 {dimension_numbers = #tpu.dot_dimension_numbers<[1], [1], [0], [0], [0, 0, 1, 0], [], []>} : vector<8x4xf32>, vector<8x4xf32>, vector<8x8xf32> -> vector<8x8xf32>
    %cst_42 = arith.constant dense<0xFF800000> : vector<8xf32>
    %111 = vector.multi_reduction <maximumf>, %110, %cst_42 [1] : vector<8x8xf32> to vector<8xf32>
    %112 = vector.shape_cast %111 : vector<8xf32> to vector<8x1xf32>
    %113 = vector.broadcast %112 : vector<8x1xf32> to vector<8x8xf32>
    %114 = arith.subf %110, %113 : vector<8x8xf32>
    %115 = math.exp %114 : vector<8x8xf32>
    %cst_43 = arith.constant dense<0.000000e+00> : vector<8xf32>
    %116 = vector.multi_reduction <add>, %115, %cst_43 [1] : vector<8x8xf32> to vector<8xf32>
    %117 = vector.shape_cast %116 : vector<8xf32> to vector<8x1xf32>
    %118 = tpu.reciprocal %117 {approx = true} : vector<8x1xf32> -> vector<8x1xf32>
    %119 = vector.broadcast %118 : vector<8x1xf32> to vector<8x8xf32>
    %120 = arith.mulf %115, %119 : vector<8x8xf32>
    %cst_44 = arith.constant dense<0.000000e+00> : vector<8x4xf32>
    %121 = tpu.matmul %120, %109, %cst_44 {dimension_numbers = #tpu.dot_dimension_numbers<[1], [0], [0], [1], [0, 0, 1, 1], [], []>} : vector<8x8xf32>, vector<8x4xf32>, vector<8x4xf32> -> vector<8x4xf32>
    %c0_45 = arith.constant 0 : index
    %c24 = arith.constant 24 : index
    %122 = vector.load %arg10[%c0_45, %c24] : memref<8x32xf32, #tpu.memory_space<vmem>>, vector<8x4xf32>
    tpu.vector_store %arg10[%c0_45, %c24], %121 {strides = array<i32>} : memref<8x32xf32, #tpu.memory_space<vmem>>, vector<8x4xf32>,
    %123 = vector.extract_strided_slice %8 {offsets = [0, 28], sizes = [8, 4], strides = [1, 1]} : vector<8x32xf32> to vector<8x4xf32>
    %124 = vector.extract_strided_slice %9 {offsets = [0, 28], sizes = [8, 4], strides = [1, 1]} : vector<8x32xf32> to vector<8x4xf32>
    %125 = vector.extract_strided_slice %10 {offsets = [0, 28], sizes = [8, 4], strides = [1, 1]} : vector<8x32xf32> to vector<8x4xf32>
    %cst_46 = arith.constant dense<0.000000e+00> : vector<8x8xf32>
    %126 = tpu.matmul %123, %124, %cst_46 {dimension_numbers = #tpu.dot_dimension_numbers<[1], [1], [0], [0], [0, 0, 1, 0], [], []>} : vector<8x4xf32>, vector<8x4xf32>, vector<8x8xf32> -> vector<8x8xf32>
    %cst_47 = arith.constant dense<0xFF800000> : vector<8xf32>
    %127 = vector.multi_reduction <maximumf>, %126, %cst_47 [1] : vector<8x8xf32> to vector<8xf32>
    %128 = vector.shape_cast %127 : vector<8xf32> to vector<8x1xf32>
    %129 = vector.broadcast %128 : vector<8x1xf32> to vector<8x8xf32>
    %130 = arith.subf %126, %129 : vector<8x8xf32>
    %131 = math.exp %130 : vector<8x8xf32>
    %cst_48 = arith.constant dense<0.000000e+00> : vector<8xf32>
    %132 = vector.multi_reduction <add>, %131, %cst_48 [1] : vector<8x8xf32> to vector<8xf32>
    %133 = vector.shape_cast %132 : vector<8xf32> to vector<8x1xf32>
    %134 = tpu.reciprocal %133 {approx = true} : vector<8x1xf32> -> vector<8x1xf32>
    %135 = vector.broadcast %134 : vector<8x1xf32> to vector<8x8xf32>
    %136 = arith.mulf %131, %135 : vector<8x8xf32>
    %cst_49 = arith.constant dense<0.000000e+00> : vector<8x4xf32>
    %137 = tpu.matmul %136, %125, %cst_49 {dimension_numbers = #tpu.dot_dimension_numbers<[1], [0], [0], [1], [0, 0, 1, 1], [], []>} : vector<8x8xf32>, vector<8x4xf32>, vector<8x4xf32> -> vector<8x4xf32>
    %c0_50 = arith.constant 0 : index
    %c28 = arith.constant 28 : index
    %138 = vector.load %arg10[%c0_50, %c28] : memref<8x32xf32, #tpu.memory_space<vmem>>, vector<8x4xf32>
    tpu.vector_store %arg10[%c0_50, %c28], %137 {strides = array<i32>} : memref<8x32xf32, #tpu.memory_space<vmem>>, vector<8x4xf32>,
    %c0_51 = arith.constant 0 : index
    %c0_52 = arith.constant 0 : index
    %139 = vector.load %arg10[%c0_51, %c0_52] : memref<8x32xf32, #tpu.memory_space<vmem>>, vector<8x32xf32>
    %140 = arith.addf %139, %4 : vector<8x32xf32>
    %c0_53 = arith.constant 0 : index
    %c0_54 = arith.constant 0 : index
    %c0_55 = arith.constant 0 : index
    %141 = vector.load %arg7[%c0_53, %c0_54, %c0_55] : memref<1x8x32xf32, #tpu.memory_space<vmem>>, vector<1x8x32xf32>
    %142 = vector.shape_cast %141 : vector<1x8x32xf32> to vector<8x32xf32>
    %143 = vector.shape_cast %140 : vector<8x32xf32> to vector<1x8x32xf32>
    tpu.vector_store %arg7[%c0_53, %c0_54, %c0_55], %143 {strides = array<i32>} : memref<1x8x32xf32, #tpu.memory_space<vmem>>, vector<1x8x32xf32>,
    return
  }
  func.func @transform_0(%arg0: i32, %arg1: i32) -> (i32, i32, i32) {
    %c0_i32 = arith.constant 0 : i32
    %c0_i32_0 = arith.constant 0 : i32
    return %arg0, %arg1, %c0_i32 : i32, i32, i32
  }
  func.func @transform_1(%arg0: i32, %arg1: i32) -> (i32, i32, i32) {
    %c0_i32 = arith.constant 0 : i32
    %c0_i32_0 = arith.constant 0 : i32
    %c0_i32_1 = arith.constant 0 : i32
    return %arg0, %c0_i32, %c0_i32_0 : i32, i32, i32
  }
  func.func @transform_2(%arg0: i32, %arg1: i32) -> (i32, i32) {
    %c0_i32 = arith.constant 0 : i32
    %c0_i32_0 = arith.constant 0 : i32
    %c0_i32_1 = arith.constant 0 : i32
    return %c0_i32, %c0_i32_0 : i32, i32
  }
  func.func @transform_3(%arg0: i32, %arg1: i32) -> (i32, i32) {
    %c0_i32 = arith.constant 0 : i32
    %c0_i32_0 = arith.constant 0 : i32
    %c0_i32_1 = arith.constant 0 : i32
    return %c0_i32, %c0_i32_0 : i32, i32
  }
  func.func @transform_4(%arg0: i32, %arg1: i32) -> (i32, i32) {
    %c0_i32 = arith.constant 0 : i32
    %c0_i32_0 = arith.constant 0 : i32
    %c0_i32_1 = arith.constant 0 : i32
    return %c0_i32, %c0_i32_0 : i32, i32
  }
  func.func @transform_5(%arg0: i32, %arg1: i32) -> (i32, i32, i32) {
    %c0_i32 = arith.constant 0 : i32
    %c0_i32_0 = arith.constant 0 : i32
    return %arg0, %arg1, %c0_i32 : i32, i32, i32
  }
}

</mosaic_0001>

<bundles_post_ra>
// kernel: tpu_custom_call.1
= control target key start
LH: loop header
LB: loop body
LE: loop exit
PB: predicated region body
PF: predicated region fallthrough
CT: control target
= control target key end

     0   :  { %s3093_s0 = inlined_call_operand.hbm [shape: f32[2,8,32], index: 0, kind: input, shape index: {}]   ;;  %s3094_s1 = inlined_call_operand.hbm [shape: f32[2,8,32], index: 1, kind: input, shape index: {}]   ;;  %s3095_s2 = inlined_call_operand.hbm [shape: f32[32,32], index: 2, kind: input, shape index: {}]   ;;  %s3096_s3 = inlined_call_operand.hbm [shape: f32[32,32], index: 3, kind: input, shape index: {}]   ;;  %s3097_s4 = inlined_call_operand.hbm [shape: f32[32,32], index: 4, kind: input, shape index: {}]   ;;  %s3098_s5 = inlined_call_operand.hbm [shape: f32[2,8,32], index: 5, kind: output, shape index: {}]  }
   0x1   :  { %3101 = sst [smem:[#allocation20_spill]] %s3093_s0 }
   0x2   :  { %3102 = sst [smem:[#allocation21_spill]] %s3095_s2 }
   0x3   :  { %3103 = sst [smem:[#allocation22_spill]] %s3096_s3 }
   0x4   :  { %10 = vsyncpa [#allocation6], 0 }
   0x5   :  { %12 = vsyncpa [#allocation6 + $0x1], 0 }
   0x6   :  { %13 = vsyncpa [#allocation9], 0 }
   0x7   :  { %15 = vsyncpa [#allocation9 + $0x1], 0 }
   0x8   :  { %16 = vsyncpa [#allocation12], 0 }
   0x9   :  { %17 = vsyncpa [#allocation7], 0 }
   0xa   :  { %19 = vsyncpa [#allocation7 + $0x1], 0  ;;  %s2727_s18 = smov 0   ;;  %s2729_s19 = smov 0  }
   0xb   :  { %s2731_s20 = smov 0   ;;  %s2733_s21 = smov 0  }
   0xc   :  { %s2735_s22 = smov 0   ;;  %s2737_s23 = smov 0  }
   0xd LB: > { %s2758_s24 = sadd.s32 4294967295, %s2671_s23   ;;  %s2089_s25 = sadd.s32 4294967294, %s2671_s23   ;;  %s2671_s23 = sphi %s2737_s23, %s25_s23   ;;  %s2667_s22 = sphi %s2735_s22, %s3125_s22   ;;  %s2663_s21 = sphi %s2733_s21, %s3124_s21   ;;  %s2659_s20 = sphi %s2731_s20, %s3123_s20   ;;  %s2655_s19 = sphi %s2729_s19, %s3122_s19   ;;  %s2651_s18 = sphi %s2727_s18, %s3121_s18  }
   0xe   : > { %p59_p0 = scmp.ne.s32.totalorder %s2655_s19, %s2651_s18  ;;  %p3099_p1 = scmp.eq.s32.totalorder %s2758_s24, 0 }
   0xf   : > { %p180_p3 = scmp.eq.s32.totalorder %s2089_s25, 1  ;;  %p2090_p5 = scmp.ge.s32.totalorder %s2671_s23, 1 }
  0x10   : > { %p2767_p4 = por %p3099_p1, %p59_p0  ;;  %p187_p7 = scmp.lt.s32.totalorder %s2671_s23, 3 }
  0x11   : > { %p2772_p6 = por %p180_p3, %p59_p0  ;;  %s2673_s29 = smov [#allocation10]  }
  0x12   : > { %s3104_s26 = scalar_select %p2767_p4, 1, 0 }
  0x13   : > { %s3105_s27 = scalar_select %p2772_p6, 1, 0 }
  0x14   : > { %p2777_p8 = pnand %p2090_p5, %p187_p7  ;;  %s199_s30 = sshll.u32 %s2673_s29, 4  ;;  %s200_s30 = int_to_ptr.vmem [resolvable:$true] %s199_s30 }
  0x15   : > { %s2674_s7 = smov [#allocation11]   ;;  %s2675_s9 = smov [#allocation13]  }
  0x16   : > { %p2315_p9 = pneg %p2777_p8  ;;  %s212_s8 = sshll.u32 %s2674_s7, 4  ;;  %s213_s8 = int_to_ptr.vmem [resolvable:$true] %s212_s8 }
  0x17   : > { %s225_s10 = sshll.u32 %s2675_s9, 4  ;;  %s2456_s11 = scalar_lea.vmem %s200_s30, 512  ;;  %s226_s10 = int_to_ptr.vmem [resolvable:$true] %s225_s10 }
  0x18   : > { %p2786_p11 = pnand %p2315_p9, %p3099_p1  ;;  %p2457_p13 = scmp.ne.s32.totalorder %s200_s30, %s2456_s11 }
  0x19   : > { %p2464_p5 = scmp.lt.s32.totalorder %s200_s30, %s200_s30  ;;  %p2465_p7 = scmp.lt.s32.totalorder %s2456_s11, %s2456_s11 }
  0x1a   : > { %p2447_p12 = pneg %p2786_p11 }
  0x1b   : > { %p2466_p9 = por %p2465_p7, %p2464_p5 }
  0x1c   : > { %p2459_p0 = pnand %p2457_p13, %p2447_p12 }
  0x1e   : > { %p2460_p3 = pneg %p2459_p0 }
  0x20   : > { %p2467_p10 = pnand %p2466_p9, %p2460_p3 }
  0x22   : > { %2470 = shalt.err (!%p2467_p10)
}
  0x23   : > { %s2676_s12 = smov 128   ;;  %s2677_s13 = smov 8  }
  0x24   : > { %s3108_s2 = sld [smem:[#allocation21_spill]]  ;;  %s2482_s16 = scalar_lea.vmem %s213_s8, 512 }
  0x25   : > { %p2483_p1 = scmp.ne.s32.totalorder %s213_s8, %s2482_s16  ;;  %p2490_p2 = scmp.lt.s32.totalorder %s213_s8, %s213_s8 }
  0x26   : > { %p2491_p6 = scmp.lt.s32.totalorder %s2482_s16, %s2482_s16 }
  0x27   : > { %p2485_p13 = pnand %p2483_p1, %p2447_p12 }
  0x28   : > { %p2492_p5 = por %p2491_p6, %p2490_p2 }
  0x29   : > { %p2486_p0 = pneg %p2485_p13 }
  0x2a   : > { %2318 = dma.hbm_to_vmem [thread:$0]  (!%p2786_p11), %s3108_s2, 512, %s200_s30, [#allocation9], %s2676_s12, %s2676_s12, %s2677_s13  }
  0x2b   : > { %p2493_p3 = pnand %p2492_p5, %p2486_p0 }
  0x2d   : > { %2496 = shalt.err (!%p2493_p3)
}
  0x2e   : > { %s3109_s3 = sld [smem:[#allocation22_spill]]  ;;  %s2508_s29 = scalar_lea.vmem %s226_s10, 512 }
  0x2f   : > { %p2509_p10 = scmp.ne.s32.totalorder %s226_s10, %s2508_s29  ;;  %p2516_p9 = scmp.lt.s32.totalorder %s226_s10, %s226_s10 }
  0x30   : > { %p2517_p13 = scmp.lt.s32.totalorder %s2508_s29, %s2508_s29 }
  0x31   : > { %p2511_p7 = pnand %p2509_p10, %p2447_p12 }
  0x32   : > { %p2518_p4 = por %p2517_p13, %p2516_p9 }
  0x33   : > { %p2512_p1 = pneg %p2511_p7 }
  0x34   : > { %2321 = dma.hbm_to_vmem [thread:$0]  (!%p2786_p11), %s3109_s3, 512, %s213_s8, [#allocation12], %s2676_s12, %s2676_s12, %s2677_s13  }
  0x35   : > { %p2519_p2 = pnand %p2518_p4, %p2512_p1 }
  0x37   : > { %2522 = shalt.err (!%p2519_p2)
}
  0x38   : > { %2324 = dma.hbm_to_vmem [thread:$0]  (!%p2786_p11), %s3097_s4, 512, %s226_s10, [#allocation12], %s2676_s12, %s2676_s12, %s2677_s13  }
  0x39   : > { %s46_s8 = sadd.s32 1, %s2659_s20  ;;  %s37_s9 = sadd.s32 1, %s2667_s22 }
  0x3a   : > { %p53_p4 = scmp.ne.s32.totalorder %s2659_s20, %s2655_s19  ;;  %p39_p6 = scmp.ge.s32.totalorder %s37_s9, 2 }
  0x3b   : > { %p54_p12 = scmp.eq.s32.totalorder %s2671_s23, 0  ;;  %p3110_p0 = scmp.eq.s32.totalorder %s2758_s24, 1 }
  0x3c   : > { %p2339_p3 = scmp.lt.s32.totalorder %s2671_s23, 2  ;;  %s3127_s9 = smov (%p39_p6, %s37_s9), 0 }
  0x3d   : > { %p2823_p5 = por %p3110_p0, %p53_p4  ;;  %p55_p10 = por %p54_p12, %p53_p4 }
  0x3e   : > { %s239_s11 = sand.u32 1, %s2659_s20   ;;  %s41_s14 = ssub.s32 %s2667_s22, %s3127_s9 }
  0x3f   : > { %p44_p11 = scmp.eq.s32.totalorder %s41_s14, 0  ;;  %s2095_s10 = sshll.u32 %s239_s11, 3 }
  0x40   : > { %s2096_s12 = sshll.u32 %s2667_s22, 7  ;;  %s3112_s0 = sld [smem:[#allocation20_spill]] }
  0x41   : > { %s2835_s13 = scalar_select %p44_p11, %s2659_s20, %s46_s8  }
  0x42   : > { %s243_s25 = scalar_lea.vmem [#allocation5], %s2095_s10  ;;  %p2842_p7 = pnand %p2339_p3, %p55_p10 }
  0x43   : > { %s251_s29 = sshll.u32 %s243_s25, 4  ;;  %s2849_s14 = scalar_lea.hbm %s3094_s1, %s2096_s12  ;;  %s252_s29 = int_to_ptr.vmem [resolvable:$true] %s251_s29 }
  0x44   : > { %s258_s8 = sand.u32 1, %s2671_s23   ;;  %s240_s3 = scalar_lea.sflag [#allocation6], %s239_s11 }
  0x45   : > { %p2525_p1 = pneg %p2842_p7  ;;  %s2536_s15 = scalar_lea.vmem %s252_s29, 128 }
  0x46   : > { %s249_s17 = scalar_lea.hbm %s3112_s0, %s2096_s12  ;;  %p2537_p9 = scmp.ne.s32.totalorder %s252_s29, %s2536_s15 }
  0x47   : > { %s2678_s16 = smov [#allocation5]  }
  0x48   : > { %p2539_p13 = pnand %p2537_p9, %p2525_p1  ;;  %s2541_s25 = sshll.u32 %s2678_s16, 4  ;;  %s2542_s25 = int_to_ptr.vmem [resolvable:$false] %s2541_s25 }
  0x49   : > { %s2543_s0 = scalar_lea.vmem %s2542_s25, 256  ;;  %p2544_p4 = scmp.lt.s32.totalorder %s252_s29, %s2542_s25 }
  0x4a   : > { %p2540_p2 = pneg %p2539_p13  ;;  %p2545_p6 = scmp.lt.s32.totalorder %s2543_s0, %s2536_s15 }
  0x4c   : > { %p2546_p12 = por %p2545_p6, %p2544_p4 }
  0x4e   : > { %p2547_p0 = pnand %p2546_p12, %p2540_p2 }
  0x50   : > { %2550 = shalt.err (!%p2547_p0)
}
  0x51   : > { %2328 = dma.hbm_to_vmem [thread:$0]  (!%p2842_p7), %s249_s17, 128, %s252_s29, %s240_s3  }
  0x52   : > { %s262_s2 = scalar_lea.vmem [#allocation8], %s2095_s10  ;;  %s259_s12 = scalar_lea.sflag [#allocation9], %s258_s8 }
  0x53   : > { %s269_s11 = sshll.u32 %s262_s2, 4  ;;  %s2679_s16 = smov [#allocation8]   ;;  %s270_s11 = int_to_ptr.vmem [resolvable:$true] %s269_s11 }
  0x54   : > { %s2564_s7 = scalar_lea.vmem %s270_s11, 128  ;;  %s2569_s25 = sshll.u32 %s2679_s16, 4  ;;  %s2570_s25 = int_to_ptr.vmem [resolvable:$false] %s2569_s25 }
  0x55   : > { %p2565_p3 = scmp.ne.s32.totalorder %s270_s11, %s2564_s7  ;;  %s2571_s0 = scalar_lea.vmem %s2570_s25, 256 }
  0x56   : > { %p2572_p9 = scmp.lt.s32.totalorder %s270_s11, %s2570_s25  ;;  %p2573_p13 = scmp.lt.s32.totalorder %s2571_s0, %s2564_s7 }
  0x57   : > { %p2567_p10 = pnand %p2565_p3, %p2525_p1 }
  0x58   : > { %p2574_p2 = por %p2573_p13, %p2572_p9 }
  0x59   : > { %p2568_p11 = pneg %p2567_p10 }
  0x5b   : > { %p2575_p4 = pnand %p2574_p2, %p2568_p11 }
  0x5d   : > { %2578 = shalt.err (!%p2575_p4)
}
  0x5e   : > { %2331 = dma.hbm_to_vmem [thread:$0]  (!%p2842_p7), %s2849_s14, 128, %s270_s11, %s259_s12  }
  0x5f   : > { %278 = sbr.rel (%p2777_p8) target bundleno = 1347 (0x543), region = 40  ;;  %s2868_s3 = sand.u32 (!%p2777_p8), 1, %s2655_s19  }
  0x60   : > { %s2871_s10 = sshll.u32 (!%p2777_p8), %s2868_s3, 3  ;;  %s281_s17 = scalar_lea.sflag (!%p2777_p8), [#allocation6], %s2868_s3 }
  0x61   : > { %s284_s29 = scalar_lea.vmem (!%p2777_p8), [#allocation5], %s2871_s10  ;;  %p3114_p1 = scmp.ne.s32.totalorder (!%p2777_p8), %s3104_s26, 0 }
  0x64   : > { %2630 = dma.done.wait (%p3114_p1), %s281_s17, 128  }
  0x65   : > { %2632 = vsyncadd (%p3114_p1), %s281_s17, 4294967168  ;;  %s289_s28 = sand.u32 1, %s2758_s24   ;;  %s293_s14 = scalar_lea.vmem [#allocation8], %s2871_s10 }
  0x66   : > { %s290_s30 = scalar_lea.sflag [#allocation9], %s289_s28 }
  0x67   : > { %2634 = dma.done.wait (%p3114_p1), %s290_s30, 128  }
  0x68   : > { %2636 = vsyncadd (%p3114_p1), %s290_s30, 4294967168  ;;  %p3115_p8 = scmp.eq.s32.totalorder %s2758_s24, 0 }
  0x6a   : > { %2638 = dma.done.wait (%p3115_p8), [#allocation9], 512   ;;  %p3116_p7 = pmov %p3115_p8 }
  0x6c   : > { %2640 = vsyncadd (%p3116_p7), [#allocation9], 4294966784  ;;  %p3117_p6 = pmov %p3116_p7 }
  0x6e   : > { %2642 = dma.done.wait (%p3117_p6), [#allocation12], 1024   ;;  %p3118_p12 = pmov %p3117_p6 }
  0x6f   : > { %v2680_v0 = vmov 0.0   ;;  %vm2681_vm0 = vmmov 0   ;;  %v345_v1 = vld [vmem:[#allocation11 + $0x18] sm:$0xff]  ;;  %v344_v2 = vld [vmem:[#allocation11 + $0x10] sm:$0xff]  ;;  %v343_v3 = vld [vmem:[#allocation11 + $0x8] sm:$0xff]  ;;  %vm346_vm1 = vcmask 261120  }
  0x70   : > { %2644 = vsyncadd (%p3118_p12), [#allocation12], 4294966272  ;;  %2184 = vmatprep.subr.mxu0 %v2680_v0  ;;  %2192 = vmatprep.mubr.msk.f32.mxu0 %vm2681_vm0, %v2680_v0  ;;  %v342_v4 = vld [vmem:[#allocation11] sm:$0xff]  ;;  %v341_v5 = vld [vmem:[%s293_s14] sm:$0xff]  ;;  %vm578_vm2 = vcmask 31744   ;;  %s2682_s24 = smov 120  }
  0x71   : > { %2195 = vmatprep.subr.mxu1 %v2680_v0  ;;  %2203 = vmatprep.mubr.msk.f32.mxu1 %vm2681_vm0, %v2680_v0  ;;  %v500_v6 = vld [vmem:[#allocation10 + $0x18] sm:$0xff]  ;;  %v499_v7 = vld [vmem:[#allocation10 + $0x10] sm:$0xff]  ;;  %v498_v8 = vld [vmem:[#allocation10 + $0x8] sm:$0xff]  ;;  %s2683_s26 = smov 124   ;;  %s2684_s8 = smov 116   ;;  %vm655_vm3 = vcmask 64512  }
  0x72   : > { %2185 = vmatpush3.msra.mxu0 %v345_v1  ;;  %v497_v9 = vld [vmem:[#allocation10] sm:$0xff]  ;;  %v423_v11 = vld [vmem:[#allocation13 + $0x18] sm:$0xff]  ;;  %v422_v12 = vld [vmem:[#allocation13 + $0x10] sm:$0xff]  ;;  %s2685_s15 = smov 112   ;;  %s2686_s2 = smov 108   ;;  %vm911_vm4 = vcmask 64544  }
  0x73   : > { %2186 = vmatprep.subr.mxu0 %v2680_v0  ;;  %v2910_v10 = vld [vmem:[%s284_s29] sm:$0xff]  ;;  %2196 = vmatpush3.msra.mxu1 %v423_v11  ;;  %s2687_s11 = smov 104   ;;  %s2688_s12 = smov 100   ;;  %vm1082_vm5 = vcmask 97344   ;;  %vm1253_vm6 = vcmask 130144   ;;  %vm1424_vm7 = vcmask 162944  }
  0x74   : > { %2187 = vmatpush3.msra.mxu0 %v344_v2  ;;  %2197 = vmatprep.subr.mxu1 %v2680_v0  ;;  %v421_v13 = vld [vmem:[#allocation13 + $0x8] sm:$0xff]  ;;  %v420_v14 = vld [vmem:[#allocation13] sm:$0xff]  ;;  %s2689_s7 = smov 4   ;;  %s2690_s16 = smov 8   ;;  %vm1595_vm8 = vcmask 195744   ;;  %vm1766_vm9 = vcmask 228544  }
  0x75   : > { %2188 = vmatprep.subr.mxu0 %v2680_v0  ;;  %2198 = vmatpush3.msra.mxu1 %v422_v12  ;;  %s2691_s25 = smov 12   ;;  %s2692_s0 = smov 16   ;;  %vm1937_vm10 = vcmask 261344  }
  0x76   : > { %2189 = vmatpush3.msra.mxu0 %v343_v3  ;;  %2199 = vmatprep.subr.mxu1 %v2680_v0  ;;  %s2693_s17 = smov 20   ;;  %s2694_s29 = smov 24  }
  0x77   : > { %2190 = vmatprep.subr.mxu0 %v2680_v0  ;;  %2200 = vmatpush3.msra.mxu1 %v421_v13  ;;  %s2695_s28 = smov 28   ;;  %s2134_s30 = sshll.u32 %s2663_s21, 7 }
  0x78   : > { %2191 = vmatpush3.msra.mxu0 %v342_v4  ;;  %2201 = vmatprep.subr.mxu1 %v2680_v0  ;;  %s336_s14 = scalar_lea.vmem [#allocation14], %s2871_s10 }
  0x79   : > { %2193 = vmatmul.mubr.msk.f32.vlgmr.msra.gmra.mxu0 %vm346_vm1, %v341_v5  ;;  %2206 = vmatprep.subr.mxu0 %v2680_v0 }
  0x7a   : > { %2207 = vmatpush3.msra.mxu0 %v500_v6  ;;  %2214 = vmatprep.mubr.msk.f32.mxu0 %vm2681_vm0, %v2680_v0 }
  0x7b   : > { %2208 = vmatprep.subr.mxu0 %v2680_v0  ;;  %2202 = vmatpush3.msra.mxu1 %v420_v14 }
  0x7c   : > { %2209 = vmatpush3.msra.mxu0 %v499_v7  ;;  %2204 = vmatmul.mubr.msk.f32.vlgmr.msra.gmra.mxu1 %vm346_vm1, %v341_v5 }
  0x7d   : > { %2210 = vmatprep.subr.mxu0 %v2680_v0  ;;  %2217 = vmatprep.subr.mxu1 %v2680_v0 }
  0x7e   : > { %2211 = vmatpush3.msra.mxu0 %v498_v8  ;;  %2219 = vmatprep.mubr.msk.f32.mxu1 %vm2681_vm0, %v2680_v0 }
  0x7f   : > { %2212 = vmatprep.subr.mxu0 %v2680_v0 }
  0x80   : > { %2213 = vmatpush3.msra.mxu0 %v497_v9 }
  0x81   : > { %2215 = vmatmul.mubr.msk.f32.vlgmr.msra.gmra.mxu0 %vm346_vm1, %v2910_v10  ;;  %2227 = vmatprep.subr.mxu0 %v2680_v0 }
  0x82   : > { %2229 = vmatprep.mubr.msk.f32.mxu0 %vm2681_vm0, %v2680_v0 }
 0x139   : > { %v416_v15 = vpop.f32.mrf.mxu0 }
 0x13a   : > { %494 = vst.msk [vmem:[#allocation2] sm:$0xff] %vm346_vm1, %v416_v15 }
 0x13b   : > { %v2194_v16 = vpop.f32.mrf.mxu0 }
 0x13c   : > { %v490_v21 = vpop.f32.mrf.mxu1 }
 0x13d   : > { %495 = vst.msk [vmem:[#allocation3] sm:$0xff] %vm346_vm1, %v490_v21 }
 0x13e   : > { %v2205_v22 = vpop.f32.mrf.mxu1 }
 0x141   : > { %v571_v17 = vpop.f32.mrf.mxu0  ;;  %v576_v18 = vld [vmem:[#allocation2] sm:$0xff] }
 0x142   : > { %v575_v19 = vmul.f32 0.17677669, %v571_v17  ;;  %915 = vrot.lane.b32.xlu1 %v576_v18, %s2682_s24  ;;  %743 = vrot.lane.b32.xlu0 %v576_v18, %s2683_s26 }
 0x143   : > { %2218 = vmatpush3.xpose.msk.msra.mxu1 %vm578_vm2, %v576_v18  ;;  %v2216_v20 = vpop.f32.mrf.mxu0 }
 0x144   : > { %2222 = vmatprep.subr.mxu1 %v2680_v0  ;;  %v2944_v23 = vld [vmem:[#allocation3] sm:$0xff] }
 0x146   : > { %2220 = vmatmul.mubr.msk.f32.vlgmr.msra.gmra.mxu1 %vm578_vm2, %v575_v19  ;;  %913 = vrot.lane.b32.xlu1 %v575_v19, %s2682_s24 }
 0x147   : > { %741 = vrot.lane.b32.xlu0 %v575_v19, %s2683_s26  ;;  %2224 = vmatprep.mubr.msk.f32.mxu1 %vm2681_vm0, %v2680_v0 }
 0x148   : > { %2223 = vmatpush3.msra.mxu1 %v2944_v23 }
 0x149   : > { %2232 = vmatprep.subr.mxu1 %v2680_v0 }
 0x14a   : > { %1084 = vrot.lane.b32.xlu1 %v575_v19, %s2684_s8 }
 0x14b   : > { %1086 = vrot.lane.b32.xlu0 %v576_v18, %s2684_s8 }
 0x14e   : > { %1255 = vrot.lane.b32.xlu1 %v575_v19, %s2685_s15 }
 0x14f   : > { %1257 = vrot.lane.b32.xlu0 %v576_v18, %s2685_s15 }
 0x152   : > { %1426 = vrot.lane.b32.xlu1 %v575_v19, %s2686_s2 }
 0x153   : > { %1428 = vrot.lane.b32.xlu0 %v576_v18, %s2686_s2 }
 0x156   : > { %1597 = vrot.lane.b32.xlu1 %v575_v19, %s2687_s11 }
 0x157   : > { %1599 = vrot.lane.b32.xlu0 %v576_v18, %s2687_s11 }
 0x15a   : > { %1768 = vrot.lane.b32.xlu1 %v575_v19, %s2688_s12 }
 0x15b   : > { %1770 = vrot.lane.b32.xlu0 %v576_v18, %s2688_s12 }
 0x15e   : > { %831 = vrot.lane.b32.xlu1 %v2944_v23, %s2683_s26 }
 0x1b4   : > { %v916_v24 = vpop.permute.xlu1 %915  ;;  %v744_v25 = vpop.permute.xlu0 %743 }
 0x1b5   : > { %2228 = vmatpush3.xpose.msk.msra.mxu0 %vm578_vm2, %v744_v25 }
 0x1b6   : > { %2237 = vmatprep.subr.mxu0 %v2680_v0 }
 0x1b8   : > { %v914_v26 = vpop.permute.xlu1 %913 }
 0x1b9   : > { %v742_v27 = vpop.permute.xlu0 %741 }
 0x1ba   : > { %2230 = vmatmul.mubr.msk.f32.vlgmr.msra.gmra.mxu0 %vm578_vm2, %v742_v27 }
 0x1bb   : > { %2238 = vmatpush3.xpose.msk.msra.mxu0 %vm578_vm2, %v916_v24  ;;  %2239 = vmatprep.mubr.msk.f32.mxu0 %vm2681_vm0, %v2680_v0 }
 0x1bc   : > { %v1085_v28 = vpop.permute.xlu1 %1084  ;;  %2247 = vmatprep.subr.mxu0 %v2680_v0 }
 0x1bd   : > { %v1087_v29 = vpop.permute.xlu0 %1086 }
 0x1be   : > { %2240 = vmatmul.mubr.msk.f32.vlgmr.msra.gmra.mxu0 %vm578_vm2, %v914_v26 }
 0x1bf   : > { %2248 = vmatpush3.xpose.msk.msra.mxu0 %vm578_vm2, %v1087_v29  ;;  %2249 = vmatprep.mubr.msk.f32.mxu0 %vm2681_vm0, %v2680_v0 }
 0x1c0   : > { %v1256_v30 = vpop.permute.xlu1 %1255  ;;  %2257 = vmatprep.subr.mxu0 %v2680_v0 }
 0x1c1   : > { %v1258_v31 = vpop.permute.xlu0 %1257 }
 0x1c2   : > { %2250 = vmatmul.mubr.msk.f32.vlgmr.msra.gmra.mxu0 %vm578_vm2, %v1085_v28 }
 0x1c3   : > { %2258 = vmatpush3.xpose.msk.msra.mxu0 %vm578_vm2, %v1258_v31  ;;  %2259 = vmatprep.mubr.msk.f32.mxu0 %vm2681_vm0, %v2680_v0 }
 0x1c4   : > { %2267 = vmatprep.subr.mxu0 %v2680_v0  ;;  %v1427_v32 = vpop.permute.xlu1 %1426 }
 0x1c5   : > { %v1429_v33 = vpop.permute.xlu0 %1428 }
 0x1c6   : > { %2260 = vmatmul.mubr.msk.f32.vlgmr.msra.gmra.mxu0 %vm578_vm2, %v1256_v30 }
 0x1c7   : > { %2268 = vmatpush3.xpose.msk.msra.mxu0 %vm578_vm2, %v1429_v33  ;;  %2269 = vmatprep.mubr.msk.f32.mxu0 %vm2681_vm0, %v2680_v0 }
 0x1c8   : > { %2277 = vmatprep.subr.mxu0 %v2680_v0  ;;  %v1598_v35 = vpop.permute.xlu1 %1597 }
 0x1c9   : > { %v1600_v34 = vpop.permute.xlu0 %1599 }
 0x1ca   : > { %2270 = vmatmul.mubr.msk.f32.vlgmr.msra.gmra.mxu0 %vm578_vm2, %v1427_v32 }
 0x1cb   : > { %2278 = vmatpush3.xpose.msk.msra.mxu0 %vm578_vm2, %v1600_v34  ;;  %2279 = vmatprep.mubr.msk.f32.mxu0 %vm2681_vm0, %v2680_v0 }
 0x1cc   : > { %2287 = vmatprep.subr.mxu0 %v2680_v0  ;;  %v1769_v37 = vpop.permute.xlu1 %1768 }
 0x1cd   : > { %v1771_v36 = vpop.permute.xlu0 %1770 }
 0x1ce   : > { %2280 = vmatmul.mubr.msk.f32.vlgmr.msra.gmra.mxu0 %vm578_vm2, %v1598_v35 }
 0x1cf   : > { %2288 = vmatpush3.xpose.msk.msra.mxu0 %vm578_vm2, %v1771_v36  ;;  %2289 = vmatprep.mubr.msk.f32.mxu0 %vm2681_vm0, %v2680_v0 }
 0x1d0   : > { %v832_v4 = vpop.permute.xlu1 %831 }
 0x1d2   : > { %2290 = vmatmul.mubr.msk.f32.vlgmr.msra.gmra.mxu0 %vm578_vm2, %v1769_v37 }
 0x206   : > { %v651_v38 = vpop.f32.mrf.mxu1 }
 0x207   : > { %v656_v39 = vsel %vm655_vm3, %v651_v38, -inf }
 0x208   : > { %657 = vmax.xlane.f32.xlu0 %v656_v39  ;;  %v2221_v40 = vpop.f32.mrf.mxu1 }
 0x27a   : > { %v815_v41 = vpop.f32.mrf.mxu0 }
 0x27b   : > { %v819_v42 = vsel %vm655_vm3, %v815_v41, -inf }
 0x27c   : > { %820 = vmax.xlane.f32.xlu1 %v819_v42  ;;  %v2231_v43 = vpop.f32.mrf.mxu0 }
 0x27e   : > { %v987_v44 = vpop.f32.mrf.mxu0 }
 0x27f   : > { %v991_v45 = vsel %vm655_vm3, %v987_v44, -inf }
 0x280   : > { %992 = vmax.xlane.f32.xlu0 %v991_v45  ;;  %v2241_v46 = vpop.f32.mrf.mxu0 }
 0x282   : > { %v1158_v47 = vpop.f32.mrf.mxu0 }
 0x283   : > { %v1162_v48 = vsel %vm655_vm3, %v1158_v47, -inf }
 0x284   : > { %1163 = vmax.xlane.f32.xlu0 %v1162_v48  ;;  %v2251_v49 = vpop.f32.mrf.mxu0 }
 0x286   : > { %v1329_v50 = vpop.f32.mrf.mxu0 }
 0x287   : > { %v1333_v51 = vsel %vm655_vm3, %v1329_v50, -inf }
 0x288   : > { %1334 = vmax.xlane.f32.xlu1 %v1333_v51  ;;  %v2261_v52 = vpop.f32.mrf.mxu0 }
 0x28a   : > { %v2986_v53 = vpop.f32.mrf.mxu0 }
 0x28b   : > { %v1504_v54 = vsel %vm655_vm3, %v2986_v53, -inf }
 0x28c   : > { %1505 = vmax.xlane.f32.xlu0 %v1504_v54  ;;  %v2271_v55 = vpop.f32.mrf.mxu0 }
 0x28e   : > { %v1671_v56 = vpop.f32.mrf.mxu0 }
 0x28f   : > { %v1675_v57 = vsel %vm655_vm3, %v1671_v56, -inf }
 0x290   : > { %1676 = vmax.xlane.f32.xlu1 %v1675_v57  ;;  %v2281_v58 = vpop.f32.mrf.mxu0 }
 0x291   : > { %v658_v62 = vpop.xlane.xlu0 %657 }
 0x292   : > { %v1842_v59 = vpop.f32.mrf.mxu0  ;;  %v659_v63 = vsub.f32 %v651_v38, %v658_v62 }
 0x293   : > { %v1846_v60 = vsel %vm655_vm3, %v1842_v59, -inf }
 0x294   : > { %1847 = vmax.xlane.f32.xlu0 %v1846_v60  ;;  %v2291_v61 = vpop.f32.mrf.mxu0  ;;  %v660_v1 = vmul.f32 1.442695, %v659_v63 }
 0x296   : > { %2413 = vpow2.f32 %v660_v1 }
 0x2a1   : > { %1173 = vrot.lane.b32.xlu1 %v2944_v23, %s2684_s8 }
 0x2a3   : > { %v2414_v2 = vpop.eup %2413 }
 0x2a4   : > { %v662_v3 = vsel %vm655_vm3, %v2414_v2, 0.0 }
 0x2aa   : > { %1002 = vrot.lane.b32.xlu0 %v2944_v23, %s2682_s24  ;;  %s1957_s24 = sshll.u32 %s336_s14, 4  ;;  %s1958_s24 = int_to_ptr.vmem [resolvable:$true] %s1957_s24 }
 0x2c5   : > { %663 = vadd.xlane.f32.xlu1 %v662_v3 }
 0x2d6   : > { %1344 = vrot.lane.b32.xlu1 %v2944_v23, %s2685_s15  ;;  %s1955_s15 = scalar_lea.hbm %s3098_s5, %s2134_s30 }
 0x305   : > { %v821_v5 = vpop.xlane.xlu1 %820 }
 0x306   : > { %v822_v6 = vsub.f32 %v815_v41, %v821_v5 }
 0x308   : > { %v823_v7 = vmul.f32 1.442695, %v822_v6 }
 0x309   : > { %v993_v8 = vpop.xlane.xlu0 %992 }
 0x30a   : > { %2415 = vpow2.f32 %v823_v7  ;;  %v994_v9 = vsub.f32 %v987_v44, %v993_v8 }
 0x30c   : > { %v995_v11 = vmul.f32 1.442695, %v994_v9 }
 0x30d   : > { %v1164_v12 = vpop.xlane.xlu0 %1163 }
 0x30e   : > { %2417 = vpow2.f32 %v995_v11  ;;  %v1165_v13 = vsub.f32 %v1158_v47, %v1164_v12 }
 0x310   : > { %v1166_v14 = vmul.f32 1.442695, %v1165_v13 }
 0x311   : > { %v1335_v15 = vpop.xlane.xlu1 %1334 }
 0x312   : > { %2419 = vpow2.f32 %v1166_v14  ;;  %v1336_v16 = vsub.f32 %v1329_v50, %v1335_v15 }
 0x314   : > { %v1337_v17 = vmul.f32 1.442695, %v1336_v16 }
 0x315   : > { %v1506_v32 = vpop.xlane.xlu0 %1505 }
 0x316   : > { %2421 = vpow2.f32 %v1337_v17  ;;  %v1507_v33 = vsub.f32 %v2986_v53, %v1506_v32 }
 0x317   : > { %v2416_v18 = vpop.eup %2415 }
 0x318   : > { %v825_v19 = vsel %vm655_vm3, %v2416_v18, 0.0  ;;  %v1508_v35 = vmul.f32 1.442695, %v1507_v33 }
 0x319   : > { %v1677_v20 = vpop.xlane.xlu1 %1676  ;;  %826 = vadd.xlane.f32.xlu0 %v825_v19 }
 0x31a   : > { %v1678_v21 = vsub.f32 %v1671_v56, %v1677_v20 }
 0x31b   : > { %v2418_v22 = vpop.eup %2417 }
 0x31c   : > { %v1679_v24 = vmul.f32 1.442695, %v1678_v21  ;;  %v997_v25 = vsel %vm655_vm3, %v2418_v22, 0.0 }
 0x31d   : > { %998 = vadd.xlane.f32.xlu1 %v997_v25  ;;  %v1848_v34 = vpop.xlane.xlu0 %1847  ;;  %v1174_v38 = vpop.permute.xlu1 %1173 }
 0x31e   : > { %2423 = vpow2.f32 %v1679_v24  ;;  %v1849_v36 = vsub.f32 %v1842_v59, %v1848_v34 }
 0x31f   : > { %v2420_v26 = vpop.eup %2419  ;;  %2425 = vpow2.f32 %v1508_v35 }
 0x320   : > { %v1168_v27 = vsel %vm655_vm3, %v2420_v26, 0.0  ;;  %v1850_v37 = vmul.f32 1.442695, %v1849_v36 }
 0x321   : > { %1169 = vadd.xlane.f32.xlu0 %v1168_v27  ;;  %v1003_v46 = vpop.permute.xlu0 %1002 }
 0x322   : > { %2427 = vpow2.f32 %v1850_v37 }
 0x323   : > { %v2422_v28 = vpop.eup %2421 }
 0x324   : > { %v1339_v29 = vsel %vm655_vm3, %v2422_v28, 0.0 }
 0x325   : > { %1340 = vadd.xlane.f32.xlu1 %v1339_v29 }
 0x32b   : > { %v3003_v30 = vpop.eup %2423 }
 0x32c   : > { %v1681_v31 = vsel %vm655_vm3, %v3003_v30, 0.0  ;;  %v2426_v40 = vpop.eup %2425 }
 0x32d   : > { %1682 = vadd.xlane.f32.xlu1 %v1681_v31  ;;  %v1510_v41 = vsel %vm655_vm3, %v2426_v40, 0.0 }
 0x32f   : > { %v3013_v42 = vpop.eup %2427 }
 0x330   : > { %v1852_v43 = vsel %vm655_vm3, %v3013_v42, 0.0 }
 0x337   : > { %1515 = vrot.lane.b32.xlu0 %v2944_v23, %s2686_s2  ;;  %s1943_s2 = scalar_lea.sflag [#allocation7], %s2868_s3 }
 0x33e   : > { %1686 = vrot.lane.b32.xlu1 %v2944_v23, %s2687_s11  ;;  %s2579_s11 = scalar_lea.vmem %s1958_s24, 128 }
 0x33f   : > { %p2580_p0 = scmp.ne.s32.totalorder %s1958_s24, %s2579_s11 }
 0x341   : > { %p2581_p3 = pnand %p2580_p0, %p2823_p5 }
 0x343   : > { %p2582_p10 = pneg %p2581_p3 }
 0x34e   : > { %v664_v39 = vpop.xlane.xlu1 %663 }
 0x34f   : > { %2429 = vrcp.f32 %v664_v39 }
 0x352   : > { %v1345_v47 = vpop.permute.xlu1 %1344 }
 0x356   : > { %1511 = vadd.xlane.f32.xlu0 %v1510_v41 }
 0x35a   : > { %1853 = vadd.xlane.f32.xlu0 %v1852_v43 }
 0x35c   : > { %v2430_v44 = vpop.eup %2429 }
 0x35d   : > { %v666_v45 = vmul.f32 %v2430_v44, %v2414_v2 }
 0x35f   : > { %2225 = vmatmul.mubr.msk.f32.vlgmr.msra.gmra.mxu1 %vm655_vm3, %v666_v45 }
 0x360   : > { %2233 = vmatpush3.msra.mxu1 %v832_v4  ;;  %2234 = vmatprep.mubr.msk.f32.mxu1 %vm2681_vm0, %v2680_v0 }
 0x361   : > { %2242 = vmatprep.subr.mxu1 %v2680_v0 }
 0x370   : > { %1857 = vrot.lane.b32.xlu0 %v2944_v23, %s2688_s12  ;;  %s2696_s12 = smov [#allocation14]  }
 0x371   : > { %s2583_s21 = sshll.u32 %s2696_s12, 4  ;;  %s2584_s21 = int_to_ptr.vmem [resolvable:$false] %s2583_s21 }
 0x372   : > { %s2585_s10 = scalar_lea.vmem %s2584_s21, 256  ;;  %p2586_p11 = scmp.lt.s32.totalorder %s1958_s24, %s2584_s21 }
 0x373   : > { %p2587_p9 = scmp.lt.s32.totalorder %s2585_s10, %s2579_s11 }
 0x375   : > { %p2588_p13 = por %p2587_p9, %p2586_p11 }
 0x377   : > { %p2589_p2 = pnand %p2588_p13, %p2582_p10 }
 0x3a2   : > { %v827_v48 = vpop.xlane.xlu0 %826 }
 0x3a3   : > { %2431 = vrcp.f32 %v827_v48 }
 0x3a6   : > { %v999_v49 = vpop.xlane.xlu1 %998 }
 0x3a7   : > { %2433 = vrcp.f32 %v999_v49 }
 0x3aa   : > { %v1170_v50 = vpop.xlane.xlu0 %1169 }
 0x3ab   : > { %2435 = vrcp.f32 %v1170_v50 }
 0x3ae   : > { %v1341_v51 = vpop.xlane.xlu1 %1340  ;;  %v1516_v59 = vpop.permute.xlu0 %1515 }
 0x3af   : > { %2437 = vrcp.f32 %v1341_v51 }
 0x3b0   : > { %v2432_v52 = vpop.eup %2431 }
 0x3b1   : > { %v829_v53 = vmul.f32 %v2432_v52, %v2416_v18 }
 0x3b3   : > { %2235 = vmatmul.mubr.msk.f32.vlgmr.msra.gmra.mxu1 %vm655_vm3, %v829_v53 }
 0x3b4   : > { %v2434_v54 = vpop.eup %2433  ;;  %2243 = vmatpush3.msra.mxu1 %v1003_v46  ;;  %2244 = vmatprep.mubr.msk.f32.mxu1 %vm2681_vm0, %v2680_v0 }
 0x3b5   : > { %2252 = vmatprep.subr.mxu1 %v2680_v0  ;;  %v1001_v23 = vmul.f32 %v2434_v54, %v2418_v22 }
 0x3b6   : > { %v1683_v60 = vpop.xlane.xlu1 %1682 }
 0x3b7   : > { %2245 = vmatmul.mubr.msk.f32.vlgmr.msra.gmra.mxu1 %vm655_vm3, %v1001_v23 }
 0x3b8   : > { %v2436_v55 = vpop.eup %2435  ;;  %2253 = vmatpush3.msra.mxu1 %v1174_v38  ;;  %2254 = vmatprep.mubr.msk.f32.mxu1 %vm2681_vm0, %v2680_v0 }
 0x3b9   : > { %2262 = vmatprep.subr.mxu1 %v2680_v0  ;;  %v1172_v56 = vmul.f32 %v2436_v55, %v2420_v26 }
 0x3ba   : > { %v1687_v3 = vpop.permute.xlu1 %1686 }
 0x3bb   : > { %2255 = vmatmul.mubr.msk.f32.vlgmr.msra.gmra.mxu1 %vm655_vm3, %v1172_v56 }
 0x3bc   : > { %v2438_v57 = vpop.eup %2437  ;;  %2263 = vmatpush3.msra.mxu1 %v1345_v47  ;;  %2264 = vmatprep.mubr.msk.f32.mxu1 %vm2681_vm0, %v2680_v0 }
 0x3bd   : > { %2272 = vmatprep.subr.mxu1 %v2680_v0  ;;  %v1343_v58 = vmul.f32 %v2438_v57, %v2422_v28 }
 0x3bf   : > { %2265 = vmatmul.mubr.msk.f32.vlgmr.msra.gmra.mxu1 %vm655_vm3, %v1343_v58 }
 0x3c0   : > { %2273 = vmatpush3.msra.mxu1 %v1516_v59  ;;  %2274 = vmatprep.mubr.msk.f32.mxu1 %vm2681_vm0, %v2680_v0 }
 0x3c1   : > { %2282 = vmatprep.subr.mxu1 %v2680_v0 }
 0x3df   : > { %v1512_v61 = vpop.xlane.xlu0 %1511 }
 0x3e0   : > { %2439 = vrcp.f32 %v1512_v61 }
 0x3e1   : > { %2441 = vrcp.f32 %v1683_v60 }
 0x3e3   : > { %v1854_v62 = vpop.xlane.xlu0 %1853 }
 0x3e4   : > { %2443 = vrcp.f32 %v1854_v62 }
 0x3e7   : > { %v1858_v6 = vpop.permute.xlu0 %1857 }
 0x3ed   : > { %v2440_v63 = vpop.eup %2439 }
 0x3ee   : > { %v1514_v1 = vmul.f32 %v2440_v63, %v2426_v40  ;;  %v2442_v2 = vpop.eup %2441 }
 0x3ef   : > { %v1685_v4 = vmul.f32 %v2442_v2, %v3003_v30 }
 0x3f0   : > { %2275 = vmatmul.mubr.msk.f32.vlgmr.msra.gmra.mxu1 %vm655_vm3, %v1514_v1 }
 0x3f1   : > { %2283 = vmatpush3.msra.mxu1 %v1687_v3  ;;  %2284 = vmatprep.mubr.msk.f32.mxu1 %vm2681_vm0, %v2680_v0  ;;  %v2444_v5 = vpop.eup %2443 }
 0x3f2   : > { %2292 = vmatprep.subr.mxu1 %v2680_v0  ;;  %v1856_v7 = vmul.f32 %v2444_v5, %v3013_v42 }
 0x3f4   : > { %2285 = vmatmul.mubr.msk.f32.vlgmr.msra.gmra.mxu1 %vm655_vm3, %v1685_v4 }
 0x3f5   : > { %2293 = vmatpush3.msra.mxu1 %v1858_v6  ;;  %2294 = vmatprep.mubr.msk.f32.mxu1 %vm2681_vm0, %v2680_v0 }
 0x3f8   : > { %2295 = vmatmul.mubr.msk.f32.vlgmr.msra.gmra.mxu1 %vm655_vm3, %v1856_v7 }
 0x41f   : > { %v736_v8 = vpop.f32.mrf.mxu1 }
 0x420   : > { %740 = vst.msk [vmem:[#allocation4] sm:$0xff] %vm578_vm2, %v736_v8 }
 0x421   : > { %v2226_v9 = vpop.f32.mrf.mxu1 }
 0x473   : > { %v903_v11 = vpop.f32.mrf.mxu1 }
 0x474   : > { %908 = vrot.lane.b32.xlu1 %v903_v11, %s2689_s7 }
 0x475   : > { %v2236_v12 = vpop.f32.mrf.mxu1 }
 0x477   : > { %v1074_v13 = vpop.f32.mrf.mxu1 }
 0x478   : > { %1079 = vrot.lane.b32.xlu0 %v1074_v13, %s2690_s16 }
 0x479   : > { %v2246_v14 = vpop.f32.mrf.mxu1 }
 0x47b   : > { %v1245_v15 = vpop.f32.mrf.mxu1 }
 0x47c   : > { %1250 = vrot.lane.b32.xlu1 %v1245_v15, %s2691_s25 }
 0x47d   : > { %v2256_v0 = vpop.f32.mrf.mxu1 }
 0x47f   : > { %v1416_v16 = vpop.f32.mrf.mxu1 }
 0x480   : > { %1421 = vrot.lane.b32.xlu0 %v1416_v16, %s2692_s0 }
 0x481   : > { %v2266_v17 = vpop.f32.mrf.mxu1 }
 0x4b0   : > { %v1587_v18 = vpop.f32.mrf.mxu1 }
 0x4b1   : > { %1592 = vrot.lane.b32.xlu1 %v1587_v18, %s2693_s17 }
 0x4b2   : > { %v2276_v19 = vpop.f32.mrf.mxu1 }
 0x4b4   : > { %v1758_v20 = vpop.f32.mrf.mxu1 }
 0x4b5   : > { %1763 = vrot.lane.b32.xlu0 %v1758_v20, %s2694_s29 }
 0x4b6   : > { %v2286_v21 = vpop.f32.mrf.mxu1 }
 0x4b8   : > { %v1929_v22 = vpop.f32.mrf.mxu1 }
 0x4b9   : > { %1934 = vrot.lane.b32.xlu1 %v1929_v22, %s2695_s28 }
 0x4ba   : > { %v2296_v24 = vpop.f32.mrf.mxu1 }
 0x4e6   : > { %v909_v25 = vpop.permute.xlu1 %908 }
 0x4e7   : > { %912 = vst.msk [vmem:[#allocation4] sm:$0xff] %vm911_vm4, %v909_v25 }
 0x4ea   : > { %v1080_v26 = vpop.permute.xlu0 %1079 }
 0x4eb   : > { %1083 = vst.msk [vmem:[#allocation4] sm:$0xff] %vm1082_vm5, %v1080_v26 }
 0x4ee   : > { %v1251_v27 = vpop.permute.xlu1 %1250 }
 0x4ef   : > { %1254 = vst.msk [vmem:[#allocation4] sm:$0xff] %vm1253_vm6, %v1251_v27 }
 0x4f2   : > { %v1422_v28 = vpop.permute.xlu0 %1421 }
 0x4f3   : > { %1425 = vst.msk [vmem:[#allocation4] sm:$0xff] %vm1424_vm7, %v1422_v28 }
 0x523   : > { %v1593_v29 = vpop.permute.xlu1 %1592 }
 0x524   : > { %1596 = vst.msk [vmem:[#allocation4] sm:$0xff] %vm1595_vm8, %v1593_v29 }
 0x527   : > { %v1764_v30 = vpop.permute.xlu0 %1763 }
 0x528   : > { %1767 = vst.msk [vmem:[#allocation4] sm:$0xff] %vm1766_vm9, %v1764_v30 }
 0x52b   : > { %v1935_v31 = vpop.permute.xlu1 %1934 }
 0x52c   : > { %1938 = vst.msk [vmem:[#allocation4] sm:$0xff] %vm1937_vm10, %v1935_v31 }
 0x533   : > { %v1939_v32 = vld [vmem:[#allocation4] sm:$0xff] }
 0x534   : > { %v1940_v33 = vadd.f32 %v1939_v32, %v2910_v10 }
 0x536   : > { %1941 = vst.msk [vmem:[%s336_s14] sm:$0xff] %vm346_vm1, %v1940_v33 }
 0x537   : > { %2592 = shalt.err (!%p2589_p2)
}
 0x538   : > { %s2593_s7 = scalar_lea.hbm %s1955_s15, 128  ;;  %s2597_s25 = scalar_lea.hbm %s3098_s5, 256 }
 0x539   : > { %p2594_p4 = scmp.ne.s32.totalorder %s1955_s15, %s2593_s7  ;;  %p2598_p7 = scmp.lt.s32.totalorder %s1955_s15, %s3098_s5 }
 0x53a   : > { %p2599_p6 = scmp.lt.s32.totalorder %s2597_s25, %s2593_s7 }
 0x53b   : > { %p2595_p1 = pnand %p2594_p4, %p2823_p5 }
 0x53c   : > { %p2600_p12 = por %p2599_p6, %p2598_p7 }
 0x53d   : > { %p2596_p8 = pneg %p2595_p1 }
 0x53f   : > { %p2601_p0 = pnand %p2600_p12, %p2596_p8 }
 0x541   : > { %2604 = shalt.err (!%p2601_p0)
}
 0x542   : > { %2313 = dma.vmem_to_hbm [thread:$0]  (%p2823_p5), %s1958_s24, 128, %s1955_s15, %s1943_s2  }
 0x543 PF: > { %s1969_s29 = sand.u32 1, %s2651_s18   ;;  %p3119_p3 = scmp.ne.s32.totalorder %s3105_s27, 0 }
 0x544   : > { %p3120_p10 = scmp.ge.s32.totalorder %s2671_s23, 2  ;;  %s1970_s28 = scalar_lea.sflag [#allocation7], %s1969_s29 }
 0x546   : > { %p2333_p11 = pnand %p3120_p10, %p3119_p3 }
 0x548   : > { %p2334_p9 = pneg %p2333_p11 }
 0x54a   : > { %2646 = dma.done.wait (%p2334_p9), %s1970_s28, 128  }
 0x54b   : > { %2648 = vsyncadd (%p2334_p9), %s1970_s28, 4294967168  ;;  %s25_s23 = sadd.s32 1, %s2671_s23   ;;  %s3121_s18 = smov %s2655_s19 }
 0x54c   : > { %p22_p13 = scmp.ge.s32.totalorder %s25_s23, 4   ;;  %s3122_s19 = smov %s2659_s20 }
 0x54d   : > { %s3123_s20 = smov %s2835_s13  ;;  %s3124_s21 = smov %s2667_s22 }
 0x54e   : > { %s3125_s22 = smov %s3127_s9  ;;  %24 = sbr.rel (!%p22_p13) target bundleno = 13 (0xd), region = 114 }
 0x553   :  { %1975 = vsyncpa [#allocation6], 1 }
 0x554   :  { %1977 = vsyncpa [#allocation6 + $0x1], 1 }
 0x555   :  { %1978 = vsyncpa [#allocation9], 1 }
 0x556   :  { %1980 = vsyncpa [#allocation9 + $0x1], 1 }
 0x557   :  { %1981 = vsyncpa [#allocation12], 1 }
 0x558   :  { %1982 = vsyncpa [#allocation7], 1 }
 0x559   :  { %1984 = vsyncpa [#allocation7 + $0x1], 1 }

</bundles_post_ra>
